<compile_context>
chip_gen: v6e
topology: v6e:2x2x1
jax: 0.10.0
libtpu: 0.0.40
codegen_flags: <defaults>
</compile_context>

<pallas_src>
import math
import numpy as np
import jax
import jax.numpy as jnp
from jax.experimental import pallas as pl
from jax.experimental.pallas import tpu as pltpu


def _round_up(n, m):
    return ((n + m - 1) // m) * m


# ----------------------------------------------------------------------------
# Mask construction (sequential order), mirrors create_masks() in PyTorch.
# ----------------------------------------------------------------------------
def create_masks_sequential(input_size, hidden_size, n_hidden):
    degrees = [np.arange(input_size)]
    for _ in range(n_hidden + 1):
        degrees.append(np.arange(hidden_size) % (input_size - 1))
    # matches torch: (arange % input_size) - 1 due to operator precedence
    degrees.append(np.arange(input_size) % input_size - 1)
    masks = []
    for d0, d1 in zip(degrees[:-1], degrees[1:]):
        masks.append((d1[:, None] >= d0[None, :]).astype(np.float32))  # (out, in)
    return masks, degrees[0]


# ----------------------------------------------------------------------------
# Pallas kernel
# ----------------------------------------------------------------------------
def _build_made_kernel(n_hidden, d_pad, has_cond):
    """Refs (in order):
         x   (TB, d_pad)  f32     -- padded x (matmul input after bf16 cast + affine)
         [y  (TB, c_pad)  bf16]   -- padded conditioner (if has_cond)
         wx  (d_pad, h_pad) bf16
         [wy (c_pad, h_pad) bf16] -- (if has_cond)
         b_in (1, h_pad) f32
         (w_h, b_h) * n_hidden    -- (h_pad, h_pad) bf16 / (1, h_pad) f32
         w_out (h_pad, 2*d_pad) bf16, b_out (1, 2*d_pad) f32
         out (TB, 2*d_pad) f32    -- u in lanes [:d_pad], neg_loga in lanes [d_pad:]
    """
    def kernel(*refs):
        idx = 0
        x_ref = refs[idx]; idx += 1
        if has_cond:
            y_ref = refs[idx]; idx += 1
        wx_ref = refs[idx]; idx += 1
        if has_cond:
            wy_ref = refs[idx]; idx += 1
        b_in_ref = refs[idx]; idx += 1

        x_f32 = x_ref[...]
        # First layer: bf16 operands, f32 MXU accumulation.
        h = jnp.dot(x_f32.astype(jnp.bfloat16), wx_ref[...],
                    preferred_element_type=jnp.float32)
        if has_cond:
            h = h + jnp.dot(y_ref[...], wy_ref[...],
                            preferred_element_type=jnp.float32)
        h = h + b_in_ref[...]

        # Hidden MaskedLinears, each preceded by f32 ReLU.
        for _ in range(n_hidden):
            w_ref, b_ref = refs[idx], refs[idx + 1]
            idx += 2
            a = jnp.maximum(h, 0.0).astype(jnp.bfloat16)
            h = jnp.dot(a, w_ref[...],
                        preferred_element_type=jnp.float32) + b_ref[...]

        w_out_ref, b_out_ref = refs[idx], refs[idx + 1]
        idx += 2
        out_ref = refs[idx]

        # Fused output layer: single dot -> (TB, 2*d_pad) = [m | loga].
        a = jnp.maximum(h, 0.0).astype(jnp.bfloat16)
        out = jnp.dot(a, w_out_ref[...],
                      preferred_element_type=jnp.float32) + b_out_ref[...]
        m = out[:, :d_pad]                  # split at 128-lane boundary (lane-dense)
        neg_loga = -out[:, d_pad:]
        u = (x_f32 - m) * jnp.exp(neg_loga)

        # Fused lane-dense output slab: [u | neg_loga].
        out_ref[:, :d_pad] = u.astype(out_ref.dtype)
        out_ref[:, d_pad:] = neg_loga.astype(out_ref.dtype)

    return kernel


# ----------------------------------------------------------------------------
# MADE module (JAX side): parameter init + Pallas wrapper
# ----------------------------------------------------------------------------
class MADEPallas:
    def __init__(self, input_size, hidden_size, n_hidden, cond_label_size=None,
                 seed=0, max_batch_tile=512):
        self.input_size = input_size
        self.hidden_size = hidden_size
        self.n_hidden = n_hidden
        self.cond_label_size = cond_label_size
        self.max_batch_tile = max_batch_tile

        D, H = input_size, hidden_size
        C = cond_label_size if cond_label_size is not None else 0
        self.has_cond = cond_label_size is not None
        self.d_pad = _round_up(D, 128)
        self.h_pad = _round_up(H, 128)
        self.c_pad = _round_up(C, 128) if self.has_cond else 0

        masks, self.input_degrees = create_masks_sequential(D, H, n_hidden)

        key = jax.random.PRNGKey(seed)

        def linear_init(key, out_f, in_f):
            # nn.Linear default: uniform(-1/sqrt(in), 1/sqrt(in))
            kw, kb = jax.random.split(key)
            bound = 1.0 / math.sqrt(in_f)
            w = jax.random.uniform(kw, (out_f, in_f), jnp.float32, -bound, bound)
            b = jax.random.uniform(kb, (out_f,), jnp.float32, -bound, bound)
            return np.asarray(w), np.asarray(b)

        keys = jax.random.split(key, n_hidden + 3)

        # --- net_input: x weight and (separate) conditional weight ---
        w0, b0 = linear_init(keys[0], H, D)
        w0m = w0 * masks[0]                                   # (H, D), masked
        wx = np.zeros((self.d_pad, self.h_pad), np.float32)
        wx[:D, :H] = w0m.T
        self.wx = jnp.asarray(wx, jnp.bfloat16)
        if self.has_cond:
            # matches torch.rand(H, C) / sqrt(C)
            cw = np.asarray(jax.random.uniform(keys[1], (H, C), jnp.float32)) / math.sqrt(C)
            wy = np.zeros((self.c_pad, self.h_pad), np.float32)
            wy[:C, :H] = cw.T
            self.wy = jnp.asarray(wy, jnp.bfloat16)
        b_in = np.zeros((1, self.h_pad), np.float32)
        b_in[0, :H] = b0
        self.b_in = jnp.asarray(b_in)

        # --- hidden MaskedLinears ---
        self.hidden_params = []
        for li in range(n_hidden):
            w, b = linear_init(keys[2 + li], H, H)
            wm_ = w * masks[1 + li]                           # (H, H), masked
            wp = np.zeros((self.h_pad, self.h_pad), np.float32)
            wp[:H, :H] = wm_.T
            bp = np.zeros((1, self.h_pad), np.float32)
            bp[0, :H] = b
            self.hidden_params.append((jnp.asarray(wp, jnp.bfloat16), jnp.asarray(bp)))

        # --- output MaskedLinear (hidden -> 2D), fused into one (h_pad, 2*d_pad) ---
        wo, bo = linear_init(keys[2 + n_hidden], 2 * D, H)
        mask_out = np.tile(masks[-1], (2, 1))                 # (2D, H)
        wom = wo * mask_out
        w_out = np.zeros((self.h_pad, 2 * self.d_pad), np.float32)
        w_out[:H, :D] = wom[:D].T                             # m half in lanes [:d_pad]
        w_out[:H, self.d_pad:self.d_pad + D] = wom[D:].T      # loga half in lanes [d_pad:]
        b_out = np.zeros((1, 2 * self.d_pad), np.float32)
        b_out[0, :D] = bo[:D]
        b_out[0, self.d_pad:self.d_pad + D] = bo[D:]
        self.w_out = jnp.asarray(w_out, jnp.bfloat16)
        self.b_out = jnp.asarray(b_out)

        # flat param tuple (matches kernel ref order after the activation tiles)
        params = [self.wx]
        if self.has_cond:
            params.append(self.wy)
        params.append(self.b_in)
        for w, b in self.hidden_params:
            params += [w, b]
        params += [self.w_out, self.b_out]
        self._params = tuple(params)

        # jit the whole forward (pads + pallas_call + final slicing fuse together)
        self._jit_fwd = jax.jit(self._forward_impl)

    # ------------------------------------------------------------------
    def _weight_bytes(self):
        return sum(int(np.prod(p.shape)) * p.dtype.itemsize for p in self._params)

    def _vmem_limit_bytes(self, TB):
        wbytes = self._weight_bytes() * 2        # conservative: default double-buffering
        io = TB * self.d_pad * 4 + (TB * self.c_pad * 2 if self.has_cond else 0) \
             + TB * 2 * self.d_pad * 4
        act = 6 * TB * self.h_pad * 4            # live intermediates inside the kernel
        est = wbytes + 2 * io + act
        # cap well below v7x's 64 MiB physical VMEM to leave compiler headroom
        return int(min(48 * 2 ** 20, max(16 * 2 ** 20, 3 * est)))

    # ------------------------------------------------------------------
    def _pick_tile(self, B):
        TB = min(self.max_batch_tile, _round_up(B, 16))       # bf16 min tile is (16,128)
        # keep grid length >= 2 when possible so v7x's 2 TensorCores are both fed
        if B >= 32 and _round_up(B, TB) // TB < 2:
            TB = _round_up(-(-B // 2), 16)
        B_pad = _round_up(B, TB)
        return TB, B_pad

    # ------------------------------------------------------------------
    def _forward_impl(self, params, x, y):
        B, D = x.shape
        TB, B_pad = self._pick_tile(B)

        x = x.astype(jnp.float32)
        x_p = jnp.pad(x, ((0, B_pad - B), (0, self.d_pad - D)))
        args = [x_p]
        if self.has_cond:
            C = self.cond_label_size
            y_p = jnp.pad(y.astype(jnp.float32),
                          ((0, B_pad - B), (0, self.c_pad - C))).astype(jnp.bfloat16)
            args.append(y_p)
        args += list(params)

        # BlockSpecs: batch-tiled activations, resident (constant-index) weights.
        # TODO(synk): resident weights could request single-buffering via
        # pipeline_mode=pl.Buffered(1) to halve their VMEM footprint on v7x.
        tiled = lambda feat: pl.BlockSpec((TB, feat), lambda b: (b, 0))
        resident = lambda shape: pl.BlockSpec(shape, lambda b: (0, 0))

        in_specs = [tiled(self.d_pad)]
        if self.has_cond:
            in_specs.append(tiled(self.c_pad))
        in_specs.append(resident((self.d_pad, self.h_pad)))           # wx
        if self.has_cond:
            in_specs.append(resident((self.c_pad, self.h_pad)))       # wy
        in_specs.append(resident((1, self.h_pad)))                    # b_in
        for _ in range(self.n_hidden):
            in_specs += [resident((self.h_pad, self.h_pad)),
                         resident((1, self.h_pad))]
        in_specs += [resident((self.h_pad, 2 * self.d_pad)),          # w_out (fused m|loga)
                     resident((1, 2 * self.d_pad))]                   # b_out
        out_specs = tiled(2 * self.d_pad)

        # Guard: resident-weight strategy must fit VMEM (double-buffered) with headroom.
        # TODO(synk): for very large hidden_size, switch to a K/N-tiled weight grid.
        assert self._weight_bytes() * 2 < 40 * 2 ** 20, \
            "hidden_size too large for resident-weight strategy; tile the weights"

        grid = (B_pad // TB,)
        kernel = _build_made_kernel(self.n_hidden, self.d_pad, self.has_cond)

        flops = 2 * B_pad * (self.d_pad * self.h_pad
                             + (self.c_pad * self.h_pad if self.has_cond else 0)
                             + self.n_hidden * self.h_pad * self.h_pad
                             + self.h_pad * 2 * self.d_pad)
        bytes_accessed = (B_pad * self.d_pad * 4
                          + (B_pad * self.c_pad * 2 if self.has_cond else 0)
                          + self._weight_bytes()
                          + B_pad * 2 * self.d_pad * 4)

        out_p = pl.pallas_call(
            kernel,
            out_shape=jax.ShapeDtypeStruct((B_pad, 2 * self.d_pad), jnp.float32),
            grid=grid,
            in_specs=in_specs,
            out_specs=out_specs,
            compiler_params=pltpu.CompilerParams(
                dimension_semantics=("parallel",),
                vmem_limit_bytes=self._vmem_limit_bytes(TB),
            ),
            cost_estimate=pl.CostEstimate(
                flops=int(flops),
                transcendentals=int(B_pad * self.d_pad),
                bytes_accessed=int(bytes_accessed),
            ),
        )(*args)

        # strip batch and lane padding (fused into the jit; layout plumbing only)
        u = out_p[:B, :D]
        neg_loga = out_p[:B, self.d_pad:self.d_pad + D]
        return u, neg_loga

    # ------------------------------------------------------------------
    def forward(self, x, y=None):
        if self.has_cond:
            assert y is not None and y.shape == (x.shape[0], self.cond_label_size)
        return self._jit_fwd(self._params, x, y)

    # ------------------------------------------------------------------
    # Pure-JAX reference mirroring the kernel's bf16-operand / f32-accumulate path.
    def forward_ref(self, x, y=None):
        B, D = x.shape
        x = x.astype(jnp.float32)
        x_p = jnp.pad(x, ((0, 0), (0, self.d_pad - D)))
        h = jnp.dot(x_p.astype(jnp.bfloat16), self.wx,
                    preferred_element_type=jnp.float32)
        if self.has_cond:
            C = self.cond_label_size
            y_p = jnp.pad(y.astype(jnp.float32),
                          ((0, 0), (0, self.c_pad - C))).astype(jnp.bfloat16)
            h = h + jnp.dot(y_p, self.wy, preferred_element_type=jnp.float32)
        h = h + self.b_in
        for w, b in self.hidden_params:
            a = jnp.maximum(h, 0.0).astype(jnp.bfloat16)
            h = jnp.dot(a, w, preferred_element_type=jnp.float32) + b
        a = jnp.maximum(h, 0.0).astype(jnp.bfloat16)
        out = jnp.dot(a, self.w_out, preferred_element_type=jnp.float32) + self.b_out
        m = out[:, :D]
        loga = out[:, self.d_pad:self.d_pad + D]
        u = (x - m) * jnp.exp(-loga)
        return u, -loga


# TODO(synk): MADE.inverse / log_prob / base_dist are sequential sampling and
# density glue around this forward pass; not implemented as kernels here.

if __name__ == "__main__":
    # Small shapes consistent with MADE: D=8, H=32, 1 hidden layer, cond C=4, B=16.
    D, H, NH, C, B = 8, 32, 1, 4, 16

    made = MADEPallas(D, H, NH, cond_label_size=C, seed=0)

    key = jax.random.PRNGKey(0)
    kx, ky = jax.random.split(key)
    x = jax.random.normal(kx, (B, D), jnp.float32)
    y = jax.random.normal(ky, (B, C), jnp.float32)

    u, lad = made.forward(x, y)
    u = jax.block_until_ready(u)
    lad = jax.block_until_ready(lad)

    u_ref, lad_ref = made.forward_ref(x, y)
    assert np.allclose(np.asarray(u), np.asarray(u_ref), rtol=1e-2, atol=1e-2)
    assert np.allclose(np.asarray(lad), np.asarray(lad_ref), rtol=1e-2, atol=1e-2)

    print("KERNEL_OK")
</pallas_src>

<mosaic_0001>
module attributes {stable_mosaic.version = 11 : i64} {
  func.func @kernel(%arg0: i32, %arg1: memref<16x128xf32, #tpu.memory_space<vmem>>, %arg2: memref<16x128xbf16, #tpu.memory_space<vmem>>, %arg3: memref<128x128xbf16, #tpu.memory_space<vmem>>, %arg4: memref<128x128xbf16, #tpu.memory_space<vmem>>, %arg5: memref<1x128xf32, #tpu.memory_space<vmem>>, %arg6: memref<128x128xbf16, #tpu.memory_space<vmem>>, %arg7: memref<1x128xf32, #tpu.memory_space<vmem>>, %arg8: memref<128x256xbf16, #tpu.memory_space<vmem>>, %arg9: memref<1x256xf32, #tpu.memory_space<vmem>>, %arg10: memref<16x256xf32, #tpu.memory_space<vmem>>) attributes {dimension_semantics = [#tpu.dimension_semantics<parallel>], iteration_bounds = array<i64: 1>, scalar_prefetch = 0 : i64, scratch_operands = 0 : i64, tpu.core_type = #tpu.core_type<tc>, window_params = [{transform_indices = @transform_0, window_bounds = array<i64: 16, 128>}, {transform_indices = @transform_1, window_bounds = array<i64: 16, 128>}, {pipeline_mode = #tpu.pipeline_mode<synchronous>, transform_indices = @transform_2, window_bounds = array<i64: 128, 128>}, {pipeline_mode = #tpu.pipeline_mode<synchronous>, transform_indices = @transform_3, window_bounds = array<i64: 128, 128>}, {pipeline_mode = #tpu.pipeline_mode<synchronous>, transform_indices = @transform_4, window_bounds = array<i64: 1, 128>}, {pipeline_mode = #tpu.pipeline_mode<synchronous>, transform_indices = @transform_5, window_bounds = array<i64: 128, 128>}, {pipeline_mode = #tpu.pipeline_mode<synchronous>, transform_indices = @transform_6, window_bounds = array<i64: 1, 128>}, {pipeline_mode = #tpu.pipeline_mode<synchronous>, transform_indices = @transform_7, window_bounds = array<i64: 128, 256>}, {pipeline_mode = #tpu.pipeline_mode<synchronous>, transform_indices = @transform_8, window_bounds = array<i64: 1, 256>}, {transform_indices = @transform_9, window_bounds = array<i64: 16, 256>}]} {
    %c0 = arith.constant 0 : index
    %c0_0 = arith.constant 0 : index
    %0 = vector.load %arg1[%c0, %c0_0] : memref<16x128xf32, #tpu.memory_space<vmem>>, vector<16x128xf32>
    %1 = arith.truncf %0 : vector<16x128xf32> to vector<16x128xbf16>
    %c0_1 = arith.constant 0 : index
    %c0_2 = arith.constant 0 : index
    %2 = vector.load %arg3[%c0_1, %c0_2] : memref<128x128xbf16, #tpu.memory_space<vmem>>, vector<128x128xbf16>
    %cst = arith.constant dense<0.000000e+00> : vector<16x128xf32>
    %3 = tpu.matmul %1, %2, %cst {dimension_numbers = #tpu.dot_dimension_numbers<[1], [0], [0], [1], [0, 0, 1, 1], [], []>} : vector<16x128xbf16>, vector<128x128xbf16>, vector<16x128xf32> -> vector<16x128xf32>
    %c0_3 = arith.constant 0 : index
    %c0_4 = arith.constant 0 : index
    %4 = vector.load %arg2[%c0_3, %c0_4] : memref<16x128xbf16, #tpu.memory_space<vmem>>, vector<16x128xbf16>
    %c0_5 = arith.constant 0 : index
    %c0_6 = arith.constant 0 : index
    %5 = vector.load %arg4[%c0_5, %c0_6] : memref<128x128xbf16, #tpu.memory_space<vmem>>, vector<128x128xbf16>
    %cst_7 = arith.constant dense<0.000000e+00> : vector<16x128xf32>
    %6 = tpu.matmul %4, %5, %cst_7 {dimension_numbers = #tpu.dot_dimension_numbers<[1], [0], [0], [1], [0, 0, 1, 1], [], []>} : vector<16x128xbf16>, vector<128x128xbf16>, vector<16x128xf32> -> vector<16x128xf32>
    %7 = arith.addf %3, %6 : vector<16x128xf32>
    %c0_8 = arith.constant 0 : index
    %c0_9 = arith.constant 0 : index
    %8 = vector.load %arg5[%c0_8, %c0_9] : memref<1x128xf32, #tpu.memory_space<vmem>>, vector<1x128xf32>
    %9 = vector.broadcast %8 : vector<1x128xf32> to vector<16x128xf32>
    %10 = arith.addf %7, %9 : vector<16x128xf32>
    %cst_10 = arith.constant 0.000000e+00 : f32
    %11 = vector.broadcast %cst_10 : f32 to vector<16x128xf32>
    %12 = arith.maximumf %10, %11 : vector<16x128xf32>
    %13 = arith.truncf %12 : vector<16x128xf32> to vector<16x128xbf16>
    %c0_11 = arith.constant 0 : index
    %c0_12 = arith.constant 0 : index
    %14 = vector.load %arg6[%c0_11, %c0_12] : memref<128x128xbf16, #tpu.memory_space<vmem>>, vector<128x128xbf16>
    %cst_13 = arith.constant dense<0.000000e+00> : vector<16x128xf32>
    %15 = tpu.matmul %13, %14, %cst_13 {dimension_numbers = #tpu.dot_dimension_numbers<[1], [0], [0], [1], [0, 0, 1, 1], [], []>} : vector<16x128xbf16>, vector<128x128xbf16>, vector<16x128xf32> -> vector<16x128xf32>
    %c0_14 = arith.constant 0 : index
    %c0_15 = arith.constant 0 : index
    %16 = vector.load %arg7[%c0_14, %c0_15] : memref<1x128xf32, #tpu.memory_space<vmem>>, vector<1x128xf32>
    %17 = vector.broadcast %16 : vector<1x128xf32> to vector<16x128xf32>
    %18 = arith.addf %15, %17 : vector<16x128xf32>
    %cst_16 = arith.constant 0.000000e+00 : f32
    %19 = vector.broadcast %cst_16 : f32 to vector<16x128xf32>
    %20 = arith.maximumf %18, %19 : vector<16x128xf32>
    %21 = arith.truncf %20 : vector<16x128xf32> to vector<16x128xbf16>
    %c0_17 = arith.constant 0 : index
    %c0_18 = arith.constant 0 : index
    %22 = vector.load %arg8[%c0_17, %c0_18] : memref<128x256xbf16, #tpu.memory_space<vmem>>, vector<128x256xbf16>
    %cst_19 = arith.constant dense<0.000000e+00> : vector<16x256xf32>
    %23 = tpu.matmul %21, %22, %cst_19 {dimension_numbers = #tpu.dot_dimension_numbers<[1], [0], [0], [1], [0, 0, 1, 1], [], []>} : vector<16x128xbf16>, vector<128x256xbf16>, vector<16x256xf32> -> vector<16x256xf32>
    %c0_20 = arith.constant 0 : index
    %c0_21 = arith.constant 0 : index
    %24 = vector.load %arg9[%c0_20, %c0_21] : memref<1x256xf32, #tpu.memory_space<vmem>>, vector<1x256xf32>
    %25 = vector.broadcast %24 : vector<1x256xf32> to vector<16x256xf32>
    %26 = arith.addf %23, %25 : vector<16x256xf32>
    %27 = vector.extract_strided_slice %26 {offsets = [0, 0], sizes = [16, 128], strides = [1, 1]} : vector<16x256xf32> to vector<16x128xf32>
    %28 = vector.extract_strided_slice %26 {offsets = [0, 128], sizes = [16, 128], strides = [1, 1]} : vector<16x256xf32> to vector<16x128xf32>
    %cst_22 = arith.constant 0.000000e+00 : f32
    %29 = vector.broadcast %cst_22 : f32 to vector<16x128xf32>
    %30 = arith.subf %29, %28 : vector<16x128xf32>
    %31 = arith.subf %0, %27 : vector<16x128xf32>
    %32 = math.exp %30 : vector<16x128xf32>
    %33 = arith.mulf %31, %32 : vector<16x128xf32>
    %c0_23 = arith.constant 0 : index
    %c0_24 = arith.constant 0 : index
    %34 = vector.load %arg10[%c0_23, %c0_24] : memref<16x256xf32, #tpu.memory_space<vmem>>, vector<16x128xf32>
    tpu.vector_store %arg10[%c0_23, %c0_24], %33 {strides = array<i32>} : memref<16x256xf32, #tpu.memory_space<vmem>>, vector<16x128xf32>,
    %c0_25 = arith.constant 0 : index
    %c128 = arith.constant 128 : index
    %35 = vector.load %arg10[%c0_25, %c128] : memref<16x256xf32, #tpu.memory_space<vmem>>, vector<16x128xf32>
    tpu.vector_store %arg10[%c0_25, %c128], %30 {strides = array<i32>} : memref<16x256xf32, #tpu.memory_space<vmem>>, vector<16x128xf32>,
    return
  }
  func.func @transform_0(%arg0: i32) -> (i32, i32) {
    %c0_i32 = arith.constant 0 : i32
    %c0_i32_0 = arith.constant 0 : i32
    return %arg0, %c0_i32 : i32, i32
  }
  func.func @transform_1(%arg0: i32) -> (i32, i32) {
    %c0_i32 = arith.constant 0 : i32
    %c0_i32_0 = arith.constant 0 : i32
    return %arg0, %c0_i32 : i32, i32
  }
  func.func @transform_2(%arg0: i32) -> (i32, i32) {
    %c0_i32 = arith.constant 0 : i32
    %c0_i32_0 = arith.constant 0 : i32
    %c0_i32_1 = arith.constant 0 : i32
    return %c0_i32, %c0_i32_0 : i32, i32
  }
  func.func @transform_3(%arg0: i32) -> (i32, i32) {
    %c0_i32 = arith.constant 0 : i32
    %c0_i32_0 = arith.constant 0 : i32
    %c0_i32_1 = arith.constant 0 : i32
    return %c0_i32, %c0_i32_0 : i32, i32
  }
  func.func @transform_4(%arg0: i32) -> (i32, i32) {
    %c0_i32 = arith.constant 0 : i32
    %c0_i32_0 = arith.constant 0 : i32
    %c0_i32_1 = arith.constant 0 : i32
    return %c0_i32, %c0_i32_0 : i32, i32
  }
  func.func @transform_5(%arg0: i32) -> (i32, i32) {
    %c0_i32 = arith.constant 0 : i32
    %c0_i32_0 = arith.constant 0 : i32
    %c0_i32_1 = arith.constant 0 : i32
    return %c0_i32, %c0_i32_0 : i32, i32
  }
  func.func @transform_6(%arg0: i32) -> (i32, i32) {
    %c0_i32 = arith.constant 0 : i32
    %c0_i32_0 = arith.constant 0 : i32
    %c0_i32_1 = arith.constant 0 : i32
    return %c0_i32, %c0_i32_0 : i32, i32
  }
  func.func @transform_7(%arg0: i32) -> (i32, i32) {
    %c0_i32 = arith.constant 0 : i32
    %c0_i32_0 = arith.constant 0 : i32
    %c0_i32_1 = arith.constant 0 : i32
    return %c0_i32, %c0_i32_0 : i32, i32
  }
  func.func @transform_8(%arg0: i32) -> (i32, i32) {
    %c0_i32 = arith.constant 0 : i32
    %c0_i32_0 = arith.constant 0 : i32
    %c0_i32_1 = arith.constant 0 : i32
    return %c0_i32, %c0_i32_0 : i32, i32
  }
  func.func @transform_9(%arg0: i32) -> (i32, i32) {
    %c0_i32 = arith.constant 0 : i32
    %c0_i32_0 = arith.constant 0 : i32
    return %arg0, %c0_i32 : i32, i32
  }
}

</mosaic_0001>

<bundles_post_ra>
// kernel: _forward_impl.1
= control target key start
LH: loop header
LB: loop body
LE: loop exit
PB: predicated region body
PF: predicated region fallthrough
CT: control target
= control target key end

     0   :  { %14 = vsyncpa [#allocation3], 0  ;;  %s1011_s0 = inlined_call_operand.vmem [shape: f32[16,128], index: 0, kind: input, shape index: {}]   ;;  %s1012_s1 = inlined_call_operand.vmem [shape: bf16[16,128], index: 1, kind: input, shape index: {}]   ;;  %s1013_s2 = inlined_call_operand.vmem [shape: bf16[128,128], index: 2, kind: input, shape index: {}]   ;;  %s1014_s3 = inlined_call_operand.hbm [shape: bf16[128,128], index: 3, kind: input, shape index: {}]   ;;  %s1015_s4 = inlined_call_operand.vmem [shape: f32[1,128], index: 4, kind: input, shape index: {}]   ;;  %s1016_s5 = inlined_call_operand.hbm [shape: bf16[128,128], index: 5, kind: input, shape index: {}]   ;;  %s1017_s6 = inlined_call_operand.vmem [shape: f32[1,128], index: 6, kind: input, shape index: {}]   ;;  %s1018_s7 = inlined_call_operand.hbm [shape: bf16[128,256], index: 7, kind: input, shape index: {}]   ;;  %s1019_s8 = inlined_call_operand.vmem [shape: f32[1,256], index: 8, kind: input, shape index: {}]   ;;  %s1020_s9 = inlined_call_operand.vmem [shape: f32[16,256], index: 9, kind: output, shape index: {}]  }
   0x1   :  { %15 = vsyncpa [#allocation5], 0  ;;  %s850_s30 = smov [#allocation4]   ;;  %s851_s11 = smov [#allocation2]  }
   0x2   :  { %s41_s10 = sshll.u32 %s850_s30, 4  ;;  %s27_s12 = sshll.u32 %s851_s11, 4  ;;  %s42_s10 = int_to_ptr.vmem [resolvable:$true] %s41_s10  ;;  %s28_s12 = int_to_ptr.vmem [resolvable:$true] %s27_s12 }
   0x3   :  { %s794_s13 = scalar_lea.vmem %s42_s10, 1024  ;;  %p799_p1 = scmp.lt.s32.totalorder %s42_s10, %s42_s10 }
   0x4   :  { %p795_p0 = scmp.ne.s32.totalorder %s42_s10, %s794_s13  ;;  %p800_p2 = scmp.lt.s32.totalorder %s794_s13, %s794_s13 }
   0x6   :  { %p801_p3 = por %p800_p2, %p799_p1 }
   0x8   :  { %p802_p4 = pnand %p801_p3, %p795_p0 }
   0xa   :  { %805 = shalt.err (!%p802_p4)
}
   0xb   :  { %s852_s14 = smov 64   ;;  %s853_s15 = smov 4  }
   0xc   :  { %47 = dma.hbm_to_vmem [thread:$0]  %s1016_s5, 1024, %s42_s10, [#allocation5], %s852_s14, %s852_s14, %s853_s15  }
   0xd   :  { %s814_s18 = scalar_lea.vmem %s28_s12, 1024  ;;  %p819_p6 = scmp.lt.s32.totalorder %s28_s12, %s28_s12 }
   0xe   :  { %p815_p5 = scmp.ne.s32.totalorder %s28_s12, %s814_s18  ;;  %p820_p7 = scmp.lt.s32.totalorder %s814_s18, %s814_s18 }
  0x10   :  { %p821_p8 = por %p820_p7, %p819_p6 }
  0x12   :  { %p822_p9 = pnand %p821_p8, %p815_p5 }
  0x14   :  { %825 = shalt.err (!%p822_p9)
}
  0x15   :  { %33 = dma.hbm_to_vmem [thread:$0]  %s1014_s3, 1024, %s28_s12, [#allocation3], %s852_s14, %s852_s14, %s853_s15  }
  0x16   :  { %s854_s21 = smov [#allocation6]  }
  0x17   :  { %s55_s22 = sshll.u32 %s854_s21, 4  ;;  %s56_s22 = int_to_ptr.vmem [resolvable:$true] %s55_s22 }
  0x18   :  { %s834_s23 = scalar_lea.vmem %s56_s22, 2048  ;;  %p839_p11 = scmp.lt.s32.totalorder %s56_s22, %s56_s22 }
  0x19   :  { %p835_p10 = scmp.ne.s32.totalorder %s56_s22, %s834_s23  ;;  %p840_p12 = scmp.lt.s32.totalorder %s834_s23, %s834_s23 }
  0x1b   :  { %p841_p13 = por %p840_p12, %p839_p11 }
  0x1d   :  { %p842_p0 = pnand %p841_p13, %p835_p10 }
  0x1f   :  { %845 = shalt.err (!%p842_p0)
}
  0x20   :  { %s855_s5 = smov 128   ;;  %s856_s24 = smov 8  }
  0x21   :  { %61 = dma.hbm_to_vmem [thread:$0]  %s1018_s7, 2048, %s56_s22, [#allocation5], %s855_s5, %s855_s5, %s856_s24  }
  0x22   :  { %846 = dma.done.wait [#allocation3], 1024  }
  0x23   :  { %847 = vsyncadd [#allocation3], 4294966272 }
  0x24   :  { %848 = dma.done.wait [#allocation5], 3072  }
  0x25   :  { %849 = vsyncadd [#allocation5], 4294964224  ;;  %v857_v0 = vmov 0.0   ;;  %vm858_vm0 = vmmov 0   ;;  %v733_v1 = vld [vmem:[#allocation2 + $0x38] sm:$0xff]   ;;  %v735_v3 = vld [vmem:[#allocation2 + $0x30] sm:$0xff]  }
  0x26   :  { %663 = vmatprep.subr.bf16.mxu0 %v857_v0  ;;  %683 = vmatprep.subr.bf16.mxu1 %v857_v0  ;;  %v734_v2 = vld [vmem:[%s1013_s2 + $0x38] sm:$0xff]   ;;  %v736_v4 = vld [vmem:[%s1013_s2 + $0x30] sm:$0xff]   ;;  %v737_v5 = vld [vmem:[#allocation2 + $0x28] sm:$0xff]   ;;  %v859_v61 = vmov 0  }
  0x27   :  { %679 = vmatprep.mubr.msk.bf16.mxu0 %vm858_vm0, %v857_v0  ;;  %699 = vmatprep.mubr.msk.bf16.mxu1 %vm858_vm0, %v857_v0  ;;  %v738_v6 = vld [vmem:[%s1013_s2 + $0x28] sm:$0xff]   ;;  %v739_v7 = vld [vmem:[#allocation2 + $0x20] sm:$0xff]   ;;  %v741_v9 = vld [vmem:[#allocation2 + $0x18] sm:$0xff]  }
  0x28   :  { %664 = vmatpush3.bf16.msra.mxu0 %v733_v1  ;;  %684 = vmatpush3.bf16.msra.mxu1 %v734_v2  ;;  %v740_v8 = vld [vmem:[%s1013_s2 + $0x20] sm:$0xff]   ;;  %v742_v10 = vld [vmem:[%s1013_s2 + $0x18] sm:$0xff]   ;;  %v743_v11 = vld [vmem:[#allocation2 + $0x10] sm:$0xff]  }
  0x29   :  { %665 = vmatprep.subr.bf16.mxu0 %v857_v0  ;;  %685 = vmatprep.subr.bf16.mxu1 %v857_v0  ;;  %v744_v12 = vld [vmem:[%s1013_s2 + $0x10] sm:$0xff]   ;;  %v745_v13 = vld [vmem:[#allocation2 + $0x8] sm:$0xff]   ;;  %v747_v15 = vld [vmem:[#allocation2] sm:$0xff]  }
  0x2a   :  { %v746_v14 = vld [vmem:[%s1013_s2 + $0x8] sm:$0xff]   ;;  %v748_v16 = vld [vmem:[%s1013_s2] sm:$0xff]   ;;  %v750_v21 = vld [vmem:[#allocation4 + $0x38] sm:$0xff]  }
  0x2b   :  { %v964_v17 = vld [vmem:[%s1011_s0] sm:$0xff]  ;;  %v969_v18 = vld [vmem:[%s1011_s0 + $0x8] sm:$0xff]  ;;  %v751_v22 = vld [vmem:[#allocation4 + $0x30] sm:$0xff]  }
  0x2c   :  { %666 = vmatpush3.bf16.msra.mxu0 %v735_v3  ;;  %686 = vmatpush3.bf16.msra.mxu1 %v736_v4  ;;  %v749_v19 = vld [vmem:[%s1012_s1] sm:$0xff]   ;;  %v76_v20 = vpack.c.bf16 %v969_v18, %v964_v17  ;;  %v752_v23 = vld [vmem:[#allocation4 + $0x28] sm:$0xff]   ;;  %v754_v25 = vld [vmem:[#allocation4 + $0x18] sm:$0xff]  }
  0x2d   :  { %667 = vmatprep.subr.bf16.mxu0 %v857_v0  ;;  %687 = vmatprep.subr.bf16.mxu1 %v857_v0  ;;  %v753_v24 = vld [vmem:[#allocation4 + $0x20] sm:$0xff]   ;;  %v755_v26 = vld [vmem:[#allocation4 + $0x10] sm:$0xff]   ;;  %v756_v27 = vld [vmem:[#allocation4 + $0x8] sm:$0xff]  }
  0x2e   :  { %v757_v28 = vld [vmem:[#allocation4] sm:$0xff]   ;;  %v758_v29 = vld [vmem:[#allocation6 + $0x70] ss:$8 sps:$4 sm:$0xff]   ;;  %v760_v30 = vld [vmem:[#allocation6 + $0x74] ss:$8 sps:$4 sm:$0xff]  }
  0x2f   :  { %v763_v31 = vld [vmem:[#allocation6 + $0x64] ss:$8 sps:$4 sm:$0xff]   ;;  %v761_v32 = vld [vmem:[#allocation6 + $0x60] ss:$8 sps:$4 sm:$0xff]   ;;  %v766_v33 = vld [vmem:[#allocation6 + $0x54] ss:$8 sps:$4 sm:$0xff]  }
  0x30   :  { %668 = vmatpush3.bf16.msra.mxu0 %v737_v5  ;;  %688 = vmatpush3.bf16.msra.mxu1 %v738_v6  ;;  %v764_v34 = vld [vmem:[#allocation6 + $0x50] ss:$8 sps:$4 sm:$0xff]   ;;  %v769_v35 = vld [vmem:[#allocation6 + $0x44] ss:$8 sps:$4 sm:$0xff]   ;;  %v767_v36 = vld [vmem:[#allocation6 + $0x40] ss:$8 sps:$4 sm:$0xff]  }
  0x31   :  { %669 = vmatprep.subr.bf16.mxu0 %v857_v0  ;;  %689 = vmatprep.subr.bf16.mxu1 %v857_v0  ;;  %v772_v37 = vld [vmem:[#allocation6 + $0x34] ss:$8 sps:$4 sm:$0xff]   ;;  %v770_v38 = vld [vmem:[#allocation6 + $0x30] ss:$8 sps:$4 sm:$0xff]   ;;  %v775_v39 = vld [vmem:[#allocation6 + $0x24] ss:$8 sps:$4 sm:$0xff]  }
  0x32   :  { %v773_v40 = vld [vmem:[#allocation6 + $0x20] ss:$8 sps:$4 sm:$0xff]   ;;  %v778_v57 = vld [vmem:[#allocation6 + $0x14] ss:$8 sps:$4 sm:$0xff]   ;;  %v776_v58 = vld [vmem:[#allocation6 + $0x10] ss:$8 sps:$4 sm:$0xff]  }
  0x33   :  { %v610_v45 = vld [vmem:[%s1015_s4] ss:$0 sm:$0xff]  ;;  %v781_v59 = vld [vmem:[#allocation6 + $0x4] ss:$8 sps:$4 sm:$0xff]  }
  0x34   :  { %670 = vmatpush3.bf16.msra.mxu0 %v739_v7  ;;  %690 = vmatpush3.bf16.msra.mxu1 %v740_v8  ;;  %v779_v60 = vld [vmem:[#allocation6] ss:$8 sps:$4 sm:$0xff]   ;;  %v440_v8 = vlaneseq }
  0x35   :  { %671 = vmatprep.subr.bf16.mxu0 %v857_v0  ;;  %691 = vmatprep.subr.bf16.mxu1 %v857_v0  ;;  %v611_v62 = vld [vmem:[%s1017_s6] ss:$0 sm:$0xff] }
  0x38   :  { %672 = vmatpush3.bf16.msra.mxu0 %v741_v9  ;;  %692 = vmatpush3.bf16.msra.mxu1 %v742_v10  ;;  %v441_v9 = vshrl.u32 %v440_v8, 7 }
  0x39   :  { %673 = vmatprep.subr.bf16.mxu0 %v857_v0  ;;  %693 = vmatprep.subr.bf16.mxu1 %v857_v0 }
  0x3a   :  { %v446_v10 = vsub.s32 1, %v441_v9 }
  0x3c   :  { %674 = vmatpush3.bf16.msra.mxu0 %v743_v11  ;;  %694 = vmatpush3.bf16.msra.mxu1 %v744_v12  ;;  %v438_v11 = vld [vmem:[%s1019_s8] sm:$0x3] }
  0x3d   :  { %675 = vmatprep.subr.bf16.mxu0 %v857_v0  ;;  %695 = vmatprep.subr.bf16.mxu1 %v857_v0  ;;  %v447_v12 = vrot.slane %v438_v11, %v446_v10 }
  0x40   :  { %676 = vmatpush3.bf16.msra.mxu0 %v745_v13  ;;  %696 = vmatpush3.bf16.msra.mxu1 %v746_v14 }
  0x41   :  { %677 = vmatprep.subr.bf16.mxu0 %v857_v0  ;;  %697 = vmatprep.subr.bf16.mxu1 %v857_v0 }
  0x44   :  { %678 = vmatpush3.bf16.msra.mxu0 %v747_v15  ;;  %698 = vmatpush3.bf16.msra.mxu1 %v748_v16 }
  0x45   :  { %703 = vmatprep.subr.bf16.mxu0 %v857_v0  ;;  %530 = vmatprep.subr.bf16.mxu1 %v760_v30 }
  0x47   :  { %680 = vmatmul.mubr.bf16.vlgmr.msra.gmra.mxu0 %v749_v19  ;;  %700 = vmatmul.mubr.bf16.vlgmr.msra.gmra.mxu1 %v76_v20 }
  0x48   :  { %704 = vmatpush3.bf16.msra.mxu0 %v750_v21  ;;  %719 = vmatprep.mubr.msk.bf16.mxu0 %vm858_vm0, %v857_v0 }
  0x49   :  { %705 = vmatprep.subr.bf16.mxu0 %v857_v0  ;;  %531 = vmatpush1.bf16.msra.mxu1 %v758_v29 }
  0x4a   :  { %532 = vmatprep.subr.bf16.mxu1 %v763_v31  ;;  %562 = vmatprep.mubr.bf16.mxu1 %v859_v61 }
  0x4c   :  { %706 = vmatpush3.bf16.msra.mxu0 %v751_v22 }
  0x4d   :  { %707 = vmatprep.subr.bf16.mxu0 %v857_v0  ;;  %533 = vmatpush1.bf16.msra.mxu1 %v761_v32 }
  0x4e   :  { %534 = vmatprep.subr.bf16.mxu1 %v766_v33 }
  0x50   :  { %708 = vmatpush3.bf16.msra.mxu0 %v752_v23  ;;  %v442_v23 = vsub.s32 0, %v441_v9 }
  0x51   :  { %709 = vmatprep.subr.bf16.mxu0 %v857_v0  ;;  %535 = vmatpush1.bf16.msra.mxu1 %v764_v34 }
  0x52   :  { %536 = vmatprep.subr.bf16.mxu1 %v769_v35 }
  0x54   :  { %710 = vmatpush3.bf16.msra.mxu0 %v753_v24 }
  0x55   :  { %711 = vmatprep.subr.bf16.mxu0 %v857_v0  ;;  %537 = vmatpush1.bf16.msra.mxu1 %v767_v36 }
  0x56   :  { %538 = vmatprep.subr.bf16.mxu1 %v772_v37 }
  0x58   :  { %712 = vmatpush3.bf16.msra.mxu0 %v754_v25 }
  0x59   :  { %713 = vmatprep.subr.bf16.mxu0 %v857_v0  ;;  %539 = vmatpush1.bf16.msra.mxu1 %v770_v38 }
  0x5a   :  { %540 = vmatprep.subr.bf16.mxu1 %v775_v39 }
  0x5c   :  { %714 = vmatpush3.bf16.msra.mxu0 %v755_v26  ;;  %v443_v26 = vrot.slane %v438_v11, %v442_v23 }
  0x5d   :  { %715 = vmatprep.subr.bf16.mxu0 %v857_v0  ;;  %541 = vmatpush1.bf16.msra.mxu1 %v773_v40 }
  0x5e   :  { %542 = vmatprep.subr.bf16.mxu1 %v778_v57 }
  0x60   :  { %716 = vmatpush3.bf16.msra.mxu0 %v756_v27 }
  0x61   :  { %717 = vmatprep.subr.bf16.mxu0 %v857_v0  ;;  %543 = vmatpush1.bf16.msra.mxu1 %v776_v58 }
  0x62   :  { %544 = vmatprep.subr.bf16.mxu1 %v781_v59 }
  0x64   :  { %718 = vmatpush3.bf16.msra.mxu0 %v757_v28 }
  0x65   :  { %545 = vmatpush1.bf16.msra.mxu1 %v779_v60 }
 0x107   :  { %v199_v41 = vpop.f32.mrf.mxu0  ;;  %v288_v42 = vpop.f32.mrf.mxu1 }
 0x108   :  { %v289_v43 = vadd.f32 %v288_v42, %v199_v41 }
 0x109   :  { %v681_v44 = vpop.f32.mrf.mxu0  ;;  %v701_v46 = vpop.f32.mrf.mxu1 }
 0x10a   :  { %v302_v49 = vadd.f32 %v610_v45, %v289_v43 }
 0x10b   :  { %v202_v47 = vpop.f32.mrf.mxu0  ;;  %v291_v48 = vpop.f32.mrf.mxu1 }
 0x10c   :  { %v292_v50 = vadd.f32 %v291_v48, %v202_v47  ;;  %v304_v54 = vmax.f32 %v302_v49, 0.0 }
 0x10d   :  { %v682_v51 = vpop.f32.mrf.mxu0  ;;  %v702_v52 = vpop.f32.mrf.mxu1 }
 0x10e   :  { %v303_v53 = vadd.f32 %v610_v45, %v292_v50 }
 0x110   :  { %v305_v55 = vmax.f32 %v303_v53, 0.0 }
 0x112   :  { %v306_v56 = vpack.c.bf16 %v305_v55, %v304_v54 }
 0x114   :  { %720 = vmatmul.mubr.bf16.vlgmr.msra.gmra.mxu0 %v306_v56 }
 0x1d4   :  { %v412_v63 = vpop.f32.mrf.mxu0 }
 0x1d5   :  { %v413_v1 = vadd.f32 %v611_v62, %v412_v63 }
 0x1d6   :  { %v721_v0 = vpop.f32.mrf.mxu0 }
 0x1d7   :  { %v419_v5 = vmax.f32 %v413_v1, 0.0 }
 0x1d8   :  { %v415_v2 = vpop.f32.mrf.mxu0 }
 0x1d9   :  { %v416_v3 = vadd.f32 %v611_v62, %v415_v2 }
 0x1da   :  { %v722_v4 = vpop.f32.mrf.mxu0 }
 0x1db   :  { %v420_v6 = vmax.f32 %v416_v3, 0.0 }
 0x1dd   :  { %v421_v7 = vpack.c.bf16 %v420_v6, %v419_v5 }
 0x1df   :  { %563 = vmatmul.mubr.bf16.vlgmr.msra.gmra.mxu1 %v421_v7 }
 0x29f   :  { %v564_v13 = vpop.f32.mrf.mxu1 }
 0x2a0   :  { %v565_v27 = vadd.f32 %v564_v13, %v443_v26 }
 0x2a1   :  { %v566_v14 = vpop.f32.mrf.mxu1 }
 0x2a2   :  { %v567_v15 = vadd.f32 %v566_v14, %v447_v12  ;;  %v575_v28 = vsub.f32 %v964_v17, %v565_v27 }
 0x2a3   :  { %v568_v16 = vpop.f32.mrf.mxu1 }
 0x2a4   :  { %v573_v19 = vsub.f32 0.0, %v567_v15  ;;  %v569_v29 = vadd.f32 %v568_v16, %v443_v26 }
 0x2a5   :  { %v570_v20 = vpop.f32.mrf.mxu1 }
 0x2a6   :  { %v577_v21 = vmul.f32 1.442695, %v573_v19  ;;  %585 = vst [vmem:[%s1020_s9 + $0x8] sm:$0xff] %v573_v19  ;;  %v571_v22 = vadd.f32 %v570_v20, %v447_v12  ;;  %v576_v32 = vsub.f32 %v969_v18, %v569_v29 }
 0x2a8   :  { %782 = vpow2.f32 %v577_v21  ;;  %v574_v24 = vsub.f32 0.0, %v571_v22 }
 0x2aa   :  { %v579_v25 = vmul.f32 1.442695, %v574_v24  ;;  %586 = vst [vmem:[%s1020_s9 + $0x18] sm:$0xff] %v574_v24 }
 0x2ac   :  { %784 = vpow2.f32 %v579_v25 }
 0x2b5   :  { %v783_v30 = vpop.eup %782 }
 0x2b6   :  { %v581_v31 = vmul.f32 %v783_v30, %v575_v28 }
 0x2b8   :  { %583 = vst [vmem:[%s1020_s9] sm:$0xff] %v581_v31 }
 0x2b9   :  { %v785_v33 = vpop.eup %784 }
 0x2ba   :  { %v582_v34 = vmul.f32 %v785_v33, %v576_v32 }
 0x2bc   :  { %584 = vst [vmem:[%s1020_s9 + $0x10] sm:$0xff] %v582_v34 }
 0x2bd   :  { %591 = vsyncpa [#allocation3], 1 }
 0x2be   :  { %592 = vsyncpa [#allocation5], 1 }

</bundles_post_ra>
